<compile_context>
chip_gen: v6e
topology: v6e:2x2x1
jax: 0.10.0
libtpu: 0.0.40
codegen_flags: <defaults>
</compile_context>

<pallas_src>
import math

import numpy as np
import jax
import jax.numpy as jnp
from jax.experimental import pallas as pl
from jax.experimental.pallas import tpu as pltpu


# ----------------------------------------------------------------------------
# Shape tracker equivalent to DataShape1d (only used to build the architecture)
# ----------------------------------------------------------------------------
class DataShape1d:
    def __init__(self, channels, length):
        self.channels, self.length = channels, length

    @property
    def shape(self):
        return (self.channels, self.length)

    @property
    def size(self):
        return self.channels * self.length

    def suggest_padding(self, kernel, stride, output_length=None):
        if output_length is None:
            output_length = -(-self.length // stride)
        total = max(0, (output_length - 1) * stride + kernel - self.length)
        if total == 0:
            return None
        return (total // 2, total - total // 2)

    def conv(self, channels, kernel, stride=1, padding=None):
        pt = sum(padding) if padding else 0
        self.length = (self.length + pt - kernel) // stride + 1
        self.channels = channels

    def pool(self, kernel, stride, padding=None):
        pt = sum(padding) if padding else 0
        self.length = (self.length + pt - kernel) // stride + 1

    def dense_block(self, depth, growth_rate):
        self.channels += depth * growth_rate

    def transition_layer(self, out_channels, padding=None):
        self.channels = out_channels
        self.pool(2, 2, padding)


# ----------------------------------------------------------------------------
# Parameter construction (deterministic, eval-mode BatchNorm statistics)
# ----------------------------------------------------------------------------
def init_bn(key, c):
    k1, k2, k3 = jax.random.split(key, 3)
    return dict(
        gamma=1.0 + 0.1 * jax.random.normal(k1, (c,), jnp.float32),
        beta=0.1 * jax.random.normal(k2, (c,), jnp.float32),
        mean=0.1 * jax.random.normal(k3, (c,), jnp.float32),
        var=jnp.ones((c,), jnp.float32),
        eps=1e-5,
    )


def init_conv(key, cout, cin, k):
    std = 1.0 / math.sqrt(cin * k)
    return std * jax.random.normal(key, (cout, cin, k), jnp.float32)


def build_cnn(key, *, class_num=3, input_size=64, growth_rate=4, kernel_size=9,
              compression=0.5, depth=2):
    """Torch-style parameters + architecture metadata mirroring CNN.__init__."""
    keys = iter(jax.random.split(key, 64))
    shape = DataShape1d(1, input_size)
    p = {'arch': {}}
    a = p['arch']
    a['class_num'] = class_num
    a['input_size'] = input_size
    a['growth'] = growth_rate
    a['K'] = kernel_size
    a['depth'] = depth
    filters = 2 * growth_rate

    pad0 = shape.suggest_padding(kernel_size, stride=2, output_length=shape.length // 2)
    p['pad0'] = pad0 if pad0 else (0, 0)
    p['conv0'] = init_conv(next(keys), filters, 1, kernel_size)
    p['bn0'] = init_bn(next(keys), filters)
    shape.conv(filters, kernel_size, stride=2, padding=pad0)
    a['C0'] = filters
    a['L_conv0'] = shape.length

    mp_pad = shape.suggest_padding(2, 2)
    p['maxpool_pad'] = mp_pad if mp_pad else (0, 0)
    shape.pool(2, 2, mp_pad)
    a['L0'] = shape.length

    dense_depth = [depth] * 3
    blocks = []
    binfo = []
    for i, d in enumerate(dense_depth):
        layers = []
        cin = shape.channels
        binfo.append(dict(L=shape.length, C_in=cin))
        for _ in range(d):
            layers.append(dict(bn=init_bn(next(keys), cin),
                               conv=init_conv(next(keys), growth_rate, cin, kernel_size)))
            cin += growth_rate
        shape.dense_block(d, growth_rate)
        block = dict(layers=layers, transition=None)
        if i != len(dense_depth) - 1:
            cout = math.floor(compression * shape.channels)
            tpad = shape.suggest_padding(2, 2)
            block['transition'] = dict(bn=init_bn(next(keys), shape.channels),
                                       conv=init_conv(next(keys), cout, shape.channels, 1),
                                       pool_pad=tpad)
            shape.transition_layer(cout, tpad)
        blocks.append(block)
    p['blocks'] = blocks
    a['blocks'] = binfo

    p['bn_final'] = init_bn(next(keys), shape.channels)
    a['C_last'] = shape.channels
    a['L_last'] = shape.length
    pool_size = math.ceil(shape.shape[1] / 2)
    p['final_pool_pad'] = shape.suggest_padding(pool_size, pool_size)
    p['pool_size'] = pool_size
    shape.pool(pool_size, pool_size, p['final_pool_pad'])
    a['L_fin'] = shape.length
    a['flatten_size'] = shape.size

    p['fc_w'] = (1.0 / math.sqrt(shape.size)) * jax.random.normal(
        next(keys), (class_num, shape.size), jnp.float32)
    p['fc_b'] = 0.01 * jnp.arange(class_num, dtype=jnp.float32)
    return p


# ----------------------------------------------------------------------------
# Build-time fusion: every conv/pool stage becomes one constant matrix
# Activation layout inside the kernel: lane index = channel * L + position.
# ----------------------------------------------------------------------------
def bn_scale_bias(bn):
    s = np.asarray(bn['gamma']) / np.sqrt(np.asarray(bn['var']) + bn['eps'])
    b = np.asarray(bn['beta']) - np.asarray(bn['mean']) * s
    return s.astype(np.float32), b.astype(np.float32)


def _stem_matrices(conv0, s0, pad_l, L_in, L0):
    """pad -> Conv1d(1,C0,K,stride=2) -> BN-scale, for the two MaxPool(2,2) branches.

    max(relu(x @ Wa + bias), relu(x @ Wb + bias)) == MaxPool(ReLU(BN(Conv(pad(x))))).
    Output lane layout: c*L0 + m.  (Hard-codes conv stride 2 / pool 2, as the module.)
    """
    C0, _, K = conv0.shape
    Wa = np.zeros((L_in, C0 * L0), np.float32)
    Wb = np.zeros((L_in, C0 * L0), np.float32)
    for c in range(C0):
        for m in range(L0):
            for r in range(L_in):
                ka = r - 4 * m + pad_l           # tap feeding stride-2 position 2m
                if 0 <= ka < K:
                    Wa[r, c * L0 + m] = s0[c] * conv0[c, 0, ka]
                kb = r - 4 * m - 2 + pad_l       # tap feeding stride-2 position 2m+1
                if 0 <= kb < K:
                    Wb[r, c * L0 + m] = s0[c] * conv0[c, 0, kb]
    return Wa, Wb


def _dense_matrix(conv_w, L, pad):
    """'Same'-padded Conv1d(cin,G,K) as a (cin*L, G*L) matrix (c-major lanes)."""
    G, cin, K = conv_w.shape
    W = np.zeros((cin * L, G * L), np.float32)
    for g in range(G):
        for c in range(cin):
            for i in range(L):
                for j in range(max(0, i - pad), min(L, i + pad + 1)):
                    W[c * L + j, g * L + i] = conv_w[g, c, j - i + pad]
    return W


def _transition_matrix(conv_w, L):
    """1x1 Conv1d(cin,cout) + AvgPool1d(2,2) as a (cin*L, cout*(L//2)) matrix."""
    cout, cin, _ = conv_w.shape
    Lh = L // 2
    W = np.zeros((cin * L, cout * Lh), np.float32)
    for co in range(cout):
        for ci in range(cin):
            w = float(conv_w[co, ci, 0])
            for m in range(Lh):
                W[ci * L + 2 * m, co * Lh + m] = 0.5 * w
                W[ci * L + 2 * m + 1, co * Lh + m] = 0.5 * w
    return W


def _head_matrix(fc_w, C_last, L_last, pool_size, out_lanes):
    """AvgPool1d(pool_size) + channel-major flatten + Linear, as one matrix."""
    nc = fc_w.shape[0]
    L_fin = L_last // pool_size
    W = np.zeros((C_last * L_last, out_lanes), np.float32)
    for cls in range(nc):
        for c in range(C_last):
            for i in range(L_last):
                W[c * L_last + i, cls] = fc_w[cls, c * L_fin + i // pool_size] / pool_size
    return W


def pack_params(p, out_lanes=128):
    """Pack all parameters into TWO slabs: a weight slab and a scale/bias row slab."""
    arch = p['arch']
    K, G = arch['K'], arch['growth']
    pad = (K - 1) // 2
    C0, L0, L_in = arch['C0'], arch['L0'], arch['input_size']
    nc = arch['class_num']

    # The fused kernel is specialized to this configuration (keep these asserts).
    assert p['maxpool_pad'] == (0, 0)
    assert 2 * L0 == arch['L_conv0']
    assert p['final_pool_pad'] is None
    assert arch['L_last'] % p['pool_size'] == 0
    for blk in p['blocks']:
        if blk['transition'] is not None:
            assert blk['transition']['pool_pad'] is None

    vec_rows = []

    def add_vec(v):
        vec_rows.append(np.asarray(v, np.float32))
        return len(vec_rows) - 1

    w_entries = []
    w_next = [0]

    def add_w(W):
        W = np.asarray(W, np.float32)
        off = w_next[0]
        w_entries.append((off, W))
        w_next[0] = off + (-(-W.shape[0] // 8) * 8)   # keep row offsets 8-aligned
        return off

    # stem: pad -> Conv(stride 2) -> BN -> ReLU -> MaxPool(2,2)  ==  2 matmuls + max
    s0, b0 = bn_scale_bias(p['bn0'])
    Wa, Wb = _stem_matrices(np.asarray(p['conv0'], np.float32), s0,
                            p['pad0'][0], L_in, L0)
    stem = dict(in_dim=L_in, out_dim=C0 * L0,
                wa_row=add_w(Wa), wb_row=add_w(Wb),
                bias_row=add_vec(np.repeat(b0, L0)))

    ops = []
    for bi, blk in enumerate(p['blocks']):
        info = arch['blocks'][bi]
        L, cin = info['L'], info['C_in']
        for layer in blk['layers']:            # SingleLayer: BN -> ReLU -> Conv -> concat
            s, b = bn_scale_bias(layer['bn'])
            ops.append(dict(kind='dense', in_dim=cin * L, out_dim=G * L,
                            w_row=add_w(_dense_matrix(
                                np.asarray(layer['conv'], np.float32), L, pad)),
                            s_row=add_vec(np.repeat(s, L)),
                            b_row=add_vec(np.repeat(b, L))))
            cin += G
        t = blk['transition']
        if t is not None:                      # Transition: BN -> ReLU -> 1x1 Conv -> AvgPool
            assert L % 2 == 0
            s, b = bn_scale_bias(t['bn'])
            cout = int(t['conv'].shape[0])
            ops.append(dict(kind='trans', in_dim=cin * L, out_dim=cout * (L // 2),
                            w_row=add_w(_transition_matrix(
                                np.asarray(t['conv'], np.float32), L)),
                            s_row=add_vec(np.repeat(s, L)),
                            b_row=add_vec(np.repeat(b, L))))

    # head: BN -> ReLU -> AvgPool(pool_size) -> flatten -> Linear  ==  1 matmul
    s, b = bn_scale_bias(p['bn_final'])
    fcb = np.zeros((out_lanes,), np.float32)
    fcb[:nc] = np.asarray(p['fc_b'], np.float32)
    ops.append(dict(kind='head', in_dim=arch['C_last'] * arch['L_last'], out_dim=out_lanes,
                    w_row=add_w(_head_matrix(np.asarray(p['fc_w'], np.float32),
                                             arch['C_last'], arch['L_last'],
                                             p['pool_size'], out_lanes)),
                    s_row=add_vec(np.repeat(s, arch['L_last'])),
                    b_row=add_vec(np.repeat(b, arch['L_last'])),
                    fcb_row=add_vec(fcb)))

    # materialize the two parameter slabs
    w_cols = -(-max(W.shape[1] for _, W in w_entries) // 128) * 128
    wslab = np.zeros((w_next[0], w_cols), np.float32)
    for off, W in w_entries:
        wslab[off:off + W.shape[0], :W.shape[1]] = W

    v_cols = -(-max(v.shape[0] for v in vec_rows) // 128) * 128
    vslab = np.zeros((-(-len(vec_rows) // 8) * 8, v_cols), np.float32)
    for r, v in enumerate(vec_rows):
        vslab[r, :v.shape[0]] = v

    slab_cols = stem['out_dim']
    for op in ops:
        slab_cols = max(slab_cols,
                        op['in_dim'] + (op['out_dim'] if op['kind'] == 'dense' else 0))
    plan = dict(stem=stem, ops=ops, L_in=L_in, out_lanes=out_lanes,
                class_num=nc, slab_cols=-(-slab_cols // 128) * 128)
    return jnp.asarray(wslab), jnp.asarray(vslab), plan


# ----------------------------------------------------------------------------
# The single fused Pallas kernel
# ----------------------------------------------------------------------------
def make_forward(wslab, vslab, plan, b_blk=8):
    L_in, out_lanes, nc = plan['L_in'], plan['out_lanes'], plan['class_num']
    stem, ops, slab_cols = plan['stem'], plan['ops'], plan['slab_cols']
    f32 = jnp.float32

    def kernel(x_ref, w_ref, v_ref, o_ref, slab_ref):
        def wmat(row, din, dout):
            return w_ref[row:row + din, 0:dout]

        def vrow(row, width):
            return v_ref[row:row + 1, 0:width]

        # ---- stem: two fused Toeplitz matmuls; elementwise max == MaxPool(2,2)
        x = x_ref[...]                                                   # (B, L_in)
        bias = vrow(stem['bias_row'], stem['out_dim'])
        ha = jnp.dot(x, wmat(stem['wa_row'], stem['in_dim'], stem['out_dim']),
                     preferred_element_type=f32) + bias
        hb = jnp.dot(x, wmat(stem['wb_row'], stem['in_dim'], stem['out_dim']),
                     preferred_element_type=f32) + bias
        slab_ref[:, 0:stem['out_dim']] = jnp.maximum(jnp.maximum(ha, hb), 0.0)

        # ---- dense layers, transitions, classifier head: ONE matmul each
        for op in ops:
            cur = slab_ref[:, 0:op['in_dim']]
            t = jnp.maximum(cur * vrow(op['s_row'], op['in_dim'])
                            + vrow(op['b_row'], op['in_dim']), 0.0)      # folded BN + ReLU
            y = jnp.dot(t, wmat(op['w_row'], op['in_dim'], op['out_dim']),
                        preferred_element_type=f32)
            if op['kind'] == 'dense':        # DenseNet concat = contiguous lane append
                slab_ref[:, op['in_dim']:op['in_dim'] + op['out_dim']] = y
            elif op['kind'] == 'trans':      # transition output restarts the slab
                slab_ref[:, 0:op['out_dim']] = y
            else:                            # head: lane-dense (B, 128) logits write
                o_ref[...] = y + vrow(op['fcb_row'], op['out_dim'])

    flops_blk = 2 * b_blk * (2 * stem['in_dim'] * stem['out_dim']
                             + sum(op['in_dim'] * op['out_dim'] for op in ops))

    @jax.jit
    def forward(x):
        N = x.shape[0]
        xr = x.reshape(N, L_in)                       # (N, C=1, L) -> (N, L)
        n_pad = -(-N // b_blk) * b_blk
        if n_pad != N:
            xr = jnp.pad(xr, ((0, n_pad - N), (0, 0)))
        n_blocks = n_pad // b_blk
        out = pl.pallas_call(
            kernel,
            out_shape=jax.ShapeDtypeStruct((n_pad, out_lanes), jnp.float32),
            grid=(n_blocks,),
            in_specs=[
                pl.BlockSpec((b_blk, L_in), lambda n: (n, 0)),
                # TODO(synk): try pipeline_mode=pl.Buffered(1) on the two constant
                # slabs (single-buffered constants) once verified on this JAX version.
                pl.BlockSpec(wslab.shape, lambda n: (0, 0)),
                pl.BlockSpec(vslab.shape, lambda n: (0, 0)),
            ],
            out_specs=pl.BlockSpec((b_blk, out_lanes), lambda n: (n, 0)),
            scratch_shapes=[pltpu.VMEM((b_blk, slab_cols), jnp.float32)],
            compiler_params=pltpu.CompilerParams(
                dimension_semantics=("parallel",)),    # batch blocks split across TCs
            cost_estimate=pl.CostEstimate(
                flops=flops_blk * n_blocks, transcendentals=0,
                bytes_accessed=4 * (xr.size + n_pad * out_lanes
                                    + wslab.size + vslab.size)),
        )(xr, wslab, vslab)
        return out[:N, :nc]

    return forward


# ----------------------------------------------------------------------------
if __name__ == "__main__":
    key = jax.random.PRNGKey(0)
    k_params, k_x = jax.random.split(key)

    # config: class_num=3, input_size=64, growth_rate=4, kernel_size=9,
    # compression=0.5, depth=2, dropout=0 (identity), bottleneck=False
    torch_style_params = build_cnn(k_params)
    wslab, vslab, plan = pack_params(torch_style_params)
    fwd = make_forward(wslab, vslab, plan, b_blk=8)

    batch = 2
    x = jax.random.normal(k_x, (batch, 1, plan['L_in']), jnp.float32)   # NCL input

    out = fwd(x)
    jax.block_until_ready(out)
    assert out.shape == (batch, plan['class_num']), out.shape
    print("KERNEL_OK")
</pallas_src>

<mosaic_0001>
module attributes {stable_mosaic.version = 11 : i64} {
  func.func @kernel(%arg0: i32, %arg1: memref<8x64xf32, #tpu.memory_space<vmem>>, %arg2: memref<1136x128xf32, #tpu.memory_space<vmem>>, %arg3: memref<24x256xf32, #tpu.memory_space<vmem>>, %arg4: memref<8x128xf32, #tpu.memory_space<vmem>>, %arg5: memref<8x256xf32, #tpu.memory_space<vmem>>) attributes {dimension_semantics = [#tpu.dimension_semantics<parallel>], iteration_bounds = array<i64: 1>, scalar_prefetch = 0 : i64, scratch_operands = 1 : i64, tpu.core_type = #tpu.core_type<tc>, window_params = [{transform_indices = @transform_0, window_bounds = array<i64: 8, 64>}, {pipeline_mode = #tpu.pipeline_mode<synchronous>, transform_indices = @transform_1, window_bounds = array<i64: 1136, 128>}, {pipeline_mode = #tpu.pipeline_mode<synchronous>, transform_indices = @transform_2, window_bounds = array<i64: 24, 256>}, {transform_indices = @transform_3, window_bounds = array<i64: 8, 128>}]} {
    %c0 = arith.constant 0 : index
    %c0_0 = arith.constant 0 : index
    %0 = vector.load %arg1[%c0, %c0_0] : memref<8x64xf32, #tpu.memory_space<vmem>>, vector<8x64xf32>
    %c0_1 = arith.constant 0 : index
    %c0_2 = arith.constant 0 : index
    %1 = vector.load %arg3[%c0_1, %c0_2] : memref<24x256xf32, #tpu.memory_space<vmem>>, vector<1x128xf32>
    %c0_3 = arith.constant 0 : index
    %c0_4 = arith.constant 0 : index
    %2 = vector.load %arg2[%c0_3, %c0_4] : memref<1136x128xf32, #tpu.memory_space<vmem>>, vector<64x128xf32>
    %cst = arith.constant dense<0.000000e+00> : vector<8x128xf32>
    %3 = tpu.matmul %0, %2, %cst {dimension_numbers = #tpu.dot_dimension_numbers<[1], [0], [0], [1], [0, 0, 1, 1], [], []>} : vector<8x64xf32>, vector<64x128xf32>, vector<8x128xf32> -> vector<8x128xf32>
    %4 = vector.broadcast %1 : vector<1x128xf32> to vector<8x128xf32>
    %5 = arith.addf %3, %4 : vector<8x128xf32>
    %c64 = arith.constant 64 : index
    %c0_5 = arith.constant 0 : index
    %6 = vector.load %arg2[%c64, %c0_5] : memref<1136x128xf32, #tpu.memory_space<vmem>>, vector<64x128xf32>
    %cst_6 = arith.constant dense<0.000000e+00> : vector<8x128xf32>
    %7 = tpu.matmul %0, %6, %cst_6 {dimension_numbers = #tpu.dot_dimension_numbers<[1], [0], [0], [1], [0, 0, 1, 1], [], []>} : vector<8x64xf32>, vector<64x128xf32>, vector<8x128xf32> -> vector<8x128xf32>
    %8 = vector.broadcast %1 : vector<1x128xf32> to vector<8x128xf32>
    %9 = arith.addf %7, %8 : vector<8x128xf32>
    %10 = arith.maximumf %5, %9 : vector<8x128xf32>
    %cst_7 = arith.constant 0.000000e+00 : f32
    %11 = vector.broadcast %cst_7 : f32 to vector<8x128xf32>
    %12 = arith.maximumf %10, %11 : vector<8x128xf32>
    %c0_8 = arith.constant 0 : index
    %c0_9 = arith.constant 0 : index
    %13 = vector.load %arg5[%c0_8, %c0_9] : memref<8x256xf32, #tpu.memory_space<vmem>>, vector<8x128xf32>
    tpu.vector_store %arg5[%c0_8, %c0_9], %12 {strides = array<i32>} : memref<8x256xf32, #tpu.memory_space<vmem>>, vector<8x128xf32>,
    %c0_10 = arith.constant 0 : index
    %c0_11 = arith.constant 0 : index
    %14 = vector.load %arg5[%c0_10, %c0_11] : memref<8x256xf32, #tpu.memory_space<vmem>>, vector<8x128xf32>
    %c1 = arith.constant 1 : index
    %c0_12 = arith.constant 0 : index
    %15 = vector.load %arg3[%c1, %c0_12] : memref<24x256xf32, #tpu.memory_space<vmem>>, vector<1x128xf32>
    %16 = vector.broadcast %15 : vector<1x128xf32> to vector<8x128xf32>
    %17 = arith.mulf %14, %16 : vector<8x128xf32>
    %c2 = arith.constant 2 : index
    %c0_13 = arith.constant 0 : index
    %18 = vector.load %arg3[%c2, %c0_13] : memref<24x256xf32, #tpu.memory_space<vmem>>, vector<1x128xf32>
    %19 = vector.broadcast %18 : vector<1x128xf32> to vector<8x128xf32>
    %20 = arith.addf %17, %19 : vector<8x128xf32>
    %cst_14 = arith.constant 0.000000e+00 : f32
    %21 = vector.broadcast %cst_14 : f32 to vector<8x128xf32>
    %22 = arith.maximumf %20, %21 : vector<8x128xf32>
    %c128 = arith.constant 128 : index
    %c0_15 = arith.constant 0 : index
    %23 = vector.load %arg2[%c128, %c0_15] : memref<1136x128xf32, #tpu.memory_space<vmem>>, vector<128x64xf32>
    %cst_16 = arith.constant dense<0.000000e+00> : vector<8x64xf32>
    %24 = tpu.matmul %22, %23, %cst_16 {dimension_numbers = #tpu.dot_dimension_numbers<[1], [0], [0], [1], [0, 0, 1, 1], [], []>} : vector<8x128xf32>, vector<128x64xf32>, vector<8x64xf32> -> vector<8x64xf32>
    %c0_17 = arith.constant 0 : index
    %c128_18 = arith.constant 128 : index
    %25 = vector.load %arg5[%c0_17, %c128_18] : memref<8x256xf32, #tpu.memory_space<vmem>>, vector<8x64xf32>
    tpu.vector_store %arg5[%c0_17, %c128_18], %24 {strides = array<i32>} : memref<8x256xf32, #tpu.memory_space<vmem>>, vector<8x64xf32>,
    %c0_19 = arith.constant 0 : index
    %c0_20 = arith.constant 0 : index
    %26 = vector.load %arg5[%c0_19, %c0_20] : memref<8x256xf32, #tpu.memory_space<vmem>>, vector<8x192xf32>
    %c3 = arith.constant 3 : index
    %c0_21 = arith.constant 0 : index
    %27 = vector.load %arg3[%c3, %c0_21] : memref<24x256xf32, #tpu.memory_space<vmem>>, vector<1x192xf32>
    %28 = vector.broadcast %27 : vector<1x192xf32> to vector<8x192xf32>
    %29 = arith.mulf %26, %28 : vector<8x192xf32>
    %c4 = arith.constant 4 : index
    %c0_22 = arith.constant 0 : index
    %30 = vector.load %arg3[%c4, %c0_22] : memref<24x256xf32, #tpu.memory_space<vmem>>, vector<1x192xf32>
    %31 = vector.broadcast %30 : vector<1x192xf32> to vector<8x192xf32>
    %32 = arith.addf %29, %31 : vector<8x192xf32>
    %cst_23 = arith.constant 0.000000e+00 : f32
    %33 = vector.broadcast %cst_23 : f32 to vector<8x192xf32>
    %34 = arith.maximumf %32, %33 : vector<8x192xf32>
    %c256 = arith.constant 256 : index
    %c0_24 = arith.constant 0 : index
    %35 = vector.load %arg2[%c256, %c0_24] : memref<1136x128xf32, #tpu.memory_space<vmem>>, vector<192x64xf32>
    %cst_25 = arith.constant dense<0.000000e+00> : vector<8x64xf32>
    %36 = tpu.matmul %34, %35, %cst_25 {dimension_numbers = #tpu.dot_dimension_numbers<[1], [0], [0], [1], [0, 0, 1, 1], [], []>} : vector<8x192xf32>, vector<192x64xf32>, vector<8x64xf32> -> vector<8x64xf32>
    %c0_26 = arith.constant 0 : index
    %c192 = arith.constant 192 : index
    %37 = vector.load %arg5[%c0_26, %c192] : memref<8x256xf32, #tpu.memory_space<vmem>>, vector<8x64xf32>
    tpu.vector_store %arg5[%c0_26, %c192], %36 {strides = array<i32>} : memref<8x256xf32, #tpu.memory_space<vmem>>, vector<8x64xf32>,
    %c0_27 = arith.constant 0 : index
    %c0_28 = arith.constant 0 : index
    %38 = vector.load %arg5[%c0_27, %c0_28] : memref<8x256xf32, #tpu.memory_space<vmem>>, vector<8x256xf32>
    %c5 = arith.constant 5 : index
    %c0_29 = arith.constant 0 : index
    %39 = vector.load %arg3[%c5, %c0_29] : memref<24x256xf32, #tpu.memory_space<vmem>>, vector<1x256xf32>
    %40 = vector.broadcast %39 : vector<1x256xf32> to vector<8x256xf32>
    %41 = arith.mulf %38, %40 : vector<8x256xf32>
    %c6 = arith.constant 6 : index
    %c0_30 = arith.constant 0 : index
    %42 = vector.load %arg3[%c6, %c0_30] : memref<24x256xf32, #tpu.memory_space<vmem>>, vector<1x256xf32>
    %43 = vector.broadcast %42 : vector<1x256xf32> to vector<8x256xf32>
    %44 = arith.addf %41, %43 : vector<8x256xf32>
    %cst_31 = arith.constant 0.000000e+00 : f32
    %45 = vector.broadcast %cst_31 : f32 to vector<8x256xf32>
    %46 = arith.maximumf %44, %45 : vector<8x256xf32>
    %c448 = arith.constant 448 : index
    %c0_32 = arith.constant 0 : index
    %47 = vector.load %arg2[%c448, %c0_32] : memref<1136x128xf32, #tpu.memory_space<vmem>>, vector<256x64xf32>
    %cst_33 = arith.constant dense<0.000000e+00> : vector<8x64xf32>
    %48 = tpu.matmul %46, %47, %cst_33 {dimension_numbers = #tpu.dot_dimension_numbers<[1], [0], [0], [1], [0, 0, 1, 1], [], []>} : vector<8x256xf32>, vector<256x64xf32>, vector<8x64xf32> -> vector<8x64xf32>
    %c0_34 = arith.constant 0 : index
    %c0_35 = arith.constant 0 : index
    %49 = vector.load %arg5[%c0_34, %c0_35] : memref<8x256xf32, #tpu.memory_space<vmem>>, vector<8x64xf32>
    tpu.vector_store %arg5[%c0_34, %c0_35], %48 {strides = array<i32>} : memref<8x256xf32, #tpu.memory_space<vmem>>, vector<8x64xf32>,
    %c0_36 = arith.constant 0 : index
    %c0_37 = arith.constant 0 : index
    %50 = vector.load %arg5[%c0_36, %c0_37] : memref<8x256xf32, #tpu.memory_space<vmem>>, vector<8x64xf32>
    %c7 = arith.constant 7 : index
    %c0_38 = arith.constant 0 : index
    %51 = vector.load %arg3[%c7, %c0_38] : memref<24x256xf32, #tpu.memory_space<vmem>>, vector<1x64xf32>
    %52 = vector.broadcast %51 : vector<1x64xf32> to vector<8x64xf32>
    %53 = arith.mulf %50, %52 : vector<8x64xf32>
    %c8 = arith.constant 8 : index
    %c0_39 = arith.constant 0 : index
    %54 = vector.load %arg3[%c8, %c0_39] : memref<24x256xf32, #tpu.memory_space<vmem>>, vector<1x64xf32>
    %55 = vector.broadcast %54 : vector<1x64xf32> to vector<8x64xf32>
    %56 = arith.addf %53, %55 : vector<8x64xf32>
    %cst_40 = arith.constant 0.000000e+00 : f32
    %57 = vector.broadcast %cst_40 : f32 to vector<8x64xf32>
    %58 = arith.maximumf %56, %57 : vector<8x64xf32>
    %c704 = arith.constant 704 : index
    %c0_41 = arith.constant 0 : index
    %59 = vector.load %arg2[%c704, %c0_41] : memref<1136x128xf32, #tpu.memory_space<vmem>>, vector<64x32xf32>
    %cst_42 = arith.constant dense<0.000000e+00> : vector<8x32xf32>
    %60 = tpu.matmul %58, %59, %cst_42 {dimension_numbers = #tpu.dot_dimension_numbers<[1], [0], [0], [1], [0, 0, 1, 1], [], []>} : vector<8x64xf32>, vector<64x32xf32>, vector<8x32xf32> -> vector<8x32xf32>
    %c0_43 = arith.constant 0 : index
    %c64_44 = arith.constant 64 : index
    %61 = vector.load %arg5[%c0_43, %c64_44] : memref<8x256xf32, #tpu.memory_space<vmem>>, vector<8x32xf32>
    tpu.vector_store %arg5[%c0_43, %c64_44], %60 {strides = array<i32>} : memref<8x256xf32, #tpu.memory_space<vmem>>, vector<8x32xf32>,
    %c0_45 = arith.constant 0 : index
    %c0_46 = arith.constant 0 : index
    %62 = vector.load %arg5[%c0_45, %c0_46] : memref<8x256xf32, #tpu.memory_space<vmem>>, vector<8x96xf32>
    %c9 = arith.constant 9 : index
    %c0_47 = arith.constant 0 : index
    %63 = vector.load %arg3[%c9, %c0_47] : memref<24x256xf32, #tpu.memory_space<vmem>>, vector<1x96xf32>
    %64 = vector.broadcast %63 : vector<1x96xf32> to vector<8x96xf32>
    %65 = arith.mulf %62, %64 : vector<8x96xf32>
    %c10 = arith.constant 10 : index
    %c0_48 = arith.constant 0 : index
    %66 = vector.load %arg3[%c10, %c0_48] : memref<24x256xf32, #tpu.memory_space<vmem>>, vector<1x96xf32>
    %67 = vector.broadcast %66 : vector<1x96xf32> to vector<8x96xf32>
    %68 = arith.addf %65, %67 : vector<8x96xf32>
    %cst_49 = arith.constant 0.000000e+00 : f32
    %69 = vector.broadcast %cst_49 : f32 to vector<8x96xf32>
    %70 = arith.maximumf %68, %69 : vector<8x96xf32>
    %c768 = arith.constant 768 : index
    %c0_50 = arith.constant 0 : index
    %71 = vector.load %arg2[%c768, %c0_50] : memref<1136x128xf32, #tpu.memory_space<vmem>>, vector<96x32xf32>
    %cst_51 = arith.constant dense<0.000000e+00> : vector<8x32xf32>
    %72 = tpu.matmul %70, %71, %cst_51 {dimension_numbers = #tpu.dot_dimension_numbers<[1], [0], [0], [1], [0, 0, 1, 1], [], []>} : vector<8x96xf32>, vector<96x32xf32>, vector<8x32xf32> -> vector<8x32xf32>
    %c0_52 = arith.constant 0 : index
    %c96 = arith.constant 96 : index
    %73 = vector.load %arg5[%c0_52, %c96] : memref<8x256xf32, #tpu.memory_space<vmem>>, vector<8x32xf32>
    tpu.vector_store %arg5[%c0_52, %c96], %72 {strides = array<i32>} : memref<8x256xf32, #tpu.memory_space<vmem>>, vector<8x32xf32>,
    %c0_53 = arith.constant 0 : index
    %c0_54 = arith.constant 0 : index
    %74 = vector.load %arg5[%c0_53, %c0_54] : memref<8x256xf32, #tpu.memory_space<vmem>>, vector<8x128xf32>
    %c11 = arith.constant 11 : index
    %c0_55 = arith.constant 0 : index
    %75 = vector.load %arg3[%c11, %c0_55] : memref<24x256xf32, #tpu.memory_space<vmem>>, vector<1x128xf32>
    %76 = vector.broadcast %75 : vector<1x128xf32> to vector<8x128xf32>
    %77 = arith.mulf %74, %76 : vector<8x128xf32>
    %c12 = arith.constant 12 : index
    %c0_56 = arith.constant 0 : index
    %78 = vector.load %arg3[%c12, %c0_56] : memref<24x256xf32, #tpu.memory_space<vmem>>, vector<1x128xf32>
    %79 = vector.broadcast %78 : vector<1x128xf32> to vector<8x128xf32>
    %80 = arith.addf %77, %79 : vector<8x128xf32>
    %cst_57 = arith.constant 0.000000e+00 : f32
    %81 = vector.broadcast %cst_57 : f32 to vector<8x128xf32>
    %82 = arith.maximumf %80, %81 : vector<8x128xf32>
    %c864 = arith.constant 864 : index
    %c0_58 = arith.constant 0 : index
    %83 = vector.load %arg2[%c864, %c0_58] : memref<1136x128xf32, #tpu.memory_space<vmem>>, vector<128x32xf32>
    %cst_59 = arith.constant dense<0.000000e+00> : vector<8x32xf32>
    %84 = tpu.matmul %82, %83, %cst_59 {dimension_numbers = #tpu.dot_dimension_numbers<[1], [0], [0], [1], [0, 0, 1, 1], [], []>} : vector<8x128xf32>, vector<128x32xf32>, vector<8x32xf32> -> vector<8x32xf32>
    %c0_60 = arith.constant 0 : index
    %c0_61 = arith.constant 0 : index
    %85 = vector.load %arg5[%c0_60, %c0_61] : memref<8x256xf32, #tpu.memory_space<vmem>>, vector<8x32xf32>
    tpu.vector_store %arg5[%c0_60, %c0_61], %84 {strides = array<i32>} : memref<8x256xf32, #tpu.memory_space<vmem>>, vector<8x32xf32>,
    %c0_62 = arith.constant 0 : index
    %c0_63 = arith.constant 0 : index
    %86 = vector.load %arg5[%c0_62, %c0_63] : memref<8x256xf32, #tpu.memory_space<vmem>>, vector<8x32xf32>
    %c13 = arith.constant 13 : index
    %c0_64 = arith.constant 0 : index
    %87 = vector.load %arg3[%c13, %c0_64] : memref<24x256xf32, #tpu.memory_space<vmem>>, vector<1x32xf32>
    %88 = vector.broadcast %87 : vector<1x32xf32> to vector<8x32xf32>
    %89 = arith.mulf %86, %88 : vector<8x32xf32>
    %c14 = arith.constant 14 : index
    %c0_65 = arith.constant 0 : index
    %90 = vector.load %arg3[%c14, %c0_65] : memref<24x256xf32, #tpu.memory_space<vmem>>, vector<1x32xf32>
    %91 = vector.broadcast %90 : vector<1x32xf32> to vector<8x32xf32>
    %92 = arith.addf %89, %91 : vector<8x32xf32>
    %cst_66 = arith.constant 0.000000e+00 : f32
    %93 = vector.broadcast %cst_66 : f32 to vector<8x32xf32>
    %94 = arith.maximumf %92, %93 : vector<8x32xf32>
    %c992 = arith.constant 992 : index
    %c0_67 = arith.constant 0 : index
    %95 = vector.load %arg2[%c992, %c0_67] : memref<1136x128xf32, #tpu.memory_space<vmem>>, vector<32x16xf32>
    %cst_68 = arith.constant dense<0.000000e+00> : vector<8x16xf32>
    %96 = tpu.matmul %94, %95, %cst_68 {dimension_numbers = #tpu.dot_dimension_numbers<[1], [0], [0], [1], [0, 0, 1, 1], [], []>} : vector<8x32xf32>, vector<32x16xf32>, vector<8x16xf32> -> vector<8x16xf32>
    %c0_69 = arith.constant 0 : index
    %c32 = arith.constant 32 : index
    %97 = vector.load %arg5[%c0_69, %c32] : memref<8x256xf32, #tpu.memory_space<vmem>>, vector<8x16xf32>
    tpu.vector_store %arg5[%c0_69, %c32], %96 {strides = array<i32>} : memref<8x256xf32, #tpu.memory_space<vmem>>, vector<8x16xf32>,
    %c0_70 = arith.constant 0 : index
    %c0_71 = arith.constant 0 : index
    %98 = vector.load %arg5[%c0_70, %c0_71] : memref<8x256xf32, #tpu.memory_space<vmem>>, vector<8x48xf32>
    %c15 = arith.constant 15 : index
    %c0_72 = arith.constant 0 : index
    %99 = vector.load %arg3[%c15, %c0_72] : memref<24x256xf32, #tpu.memory_space<vmem>>, vector<1x48xf32>
    %100 = vector.broadcast %99 : vector<1x48xf32> to vector<8x48xf32>
    %101 = arith.mulf %98, %100 : vector<8x48xf32>
    %c16 = arith.constant 16 : index
    %c0_73 = arith.constant 0 : index
    %102 = vector.load %arg3[%c16, %c0_73] : memref<24x256xf32, #tpu.memory_space<vmem>>, vector<1x48xf32>
    %103 = vector.broadcast %102 : vector<1x48xf32> to vector<8x48xf32>
    %104 = arith.addf %101, %103 : vector<8x48xf32>
    %cst_74 = arith.constant 0.000000e+00 : f32
    %105 = vector.broadcast %cst_74 : f32 to vector<8x48xf32>
    %106 = arith.maximumf %104, %105 : vector<8x48xf32>
    %c1024 = arith.constant 1024 : index
    %c0_75 = arith.constant 0 : index
    %107 = vector.load %arg2[%c1024, %c0_75] : memref<1136x128xf32, #tpu.memory_space<vmem>>, vector<48x16xf32>
    %cst_76 = arith.constant dense<0.000000e+00> : vector<8x16xf32>
    %108 = tpu.matmul %106, %107, %cst_76 {dimension_numbers = #tpu.dot_dimension_numbers<[1], [0], [0], [1], [0, 0, 1, 1], [], []>} : vector<8x48xf32>, vector<48x16xf32>, vector<8x16xf32> -> vector<8x16xf32>
    %c0_77 = arith.constant 0 : index
    %c48 = arith.constant 48 : index
    %109 = vector.load %arg5[%c0_77, %c48] : memref<8x256xf32, #tpu.memory_space<vmem>>, vector<8x16xf32>
    tpu.vector_store %arg5[%c0_77, %c48], %108 {strides = array<i32>} : memref<8x256xf32, #tpu.memory_space<vmem>>, vector<8x16xf32>,
    %c0_78 = arith.constant 0 : index
    %c0_79 = arith.constant 0 : index
    %110 = vector.load %arg5[%c0_78, %c0_79] : memref<8x256xf32, #tpu.memory_space<vmem>>, vector<8x64xf32>
    %c17 = arith.constant 17 : index
    %c0_80 = arith.constant 0 : index
    %111 = vector.load %arg3[%c17, %c0_80] : memref<24x256xf32, #tpu.memory_space<vmem>>, vector<1x64xf32>
    %112 = vector.broadcast %111 : vector<1x64xf32> to vector<8x64xf32>
    %113 = arith.mulf %110, %112 : vector<8x64xf32>
    %c18 = arith.constant 18 : index
    %c0_81 = arith.constant 0 : index
    %114 = vector.load %arg3[%c18, %c0_81] : memref<24x256xf32, #tpu.memory_space<vmem>>, vector<1x64xf32>
    %115 = vector.broadcast %114 : vector<1x64xf32> to vector<8x64xf32>
    %116 = arith.addf %113, %115 : vector<8x64xf32>
    %cst_82 = arith.constant 0.000000e+00 : f32
    %117 = vector.broadcast %cst_82 : f32 to vector<8x64xf32>
    %118 = arith.maximumf %116, %117 : vector<8x64xf32>
    %c1072 = arith.constant 1072 : index
    %c0_83 = arith.constant 0 : index
    %119 = vector.load %arg2[%c1072, %c0_83] : memref<1136x128xf32, #tpu.memory_space<vmem>>, vector<64x128xf32>
    %cst_84 = arith.constant dense<0.000000e+00> : vector<8x128xf32>
    %120 = tpu.matmul %118, %119, %cst_84 {dimension_numbers = #tpu.dot_dimension_numbers<[1], [0], [0], [1], [0, 0, 1, 1], [], []>} : vector<8x64xf32>, vector<64x128xf32>, vector<8x128xf32> -> vector<8x128xf32>
    %c19 = arith.constant 19 : index
    %c0_85 = arith.constant 0 : index
    %121 = vector.load %arg3[%c19, %c0_85] : memref<24x256xf32, #tpu.memory_space<vmem>>, vector<1x128xf32>
    %122 = vector.broadcast %121 : vector<1x128xf32> to vector<8x128xf32>
    %123 = arith.addf %120, %122 : vector<8x128xf32>
    %c0_86 = arith.constant 0 : index
    %c0_87 = arith.constant 0 : index
    %124 = vector.load %arg4[%c0_86, %c0_87] : memref<8x128xf32, #tpu.memory_space<vmem>>, vector<8x128xf32>
    tpu.vector_store %arg4[%c0_86, %c0_87], %123 {strides = array<i32>} : memref<8x128xf32, #tpu.memory_space<vmem>>, vector<8x128xf32>,
    return
  }
  func.func @transform_0(%arg0: i32) -> (i32, i32) {
    %c0_i32 = arith.constant 0 : i32
    %c0_i32_0 = arith.constant 0 : i32
    return %arg0, %c0_i32 : i32, i32
  }
  func.func @transform_1(%arg0: i32) -> (i32, i32) {
    %c0_i32 = arith.constant 0 : i32
    %c0_i32_0 = arith.constant 0 : i32
    %c0_i32_1 = arith.constant 0 : i32
    return %c0_i32, %c0_i32_0 : i32, i32
  }
  func.func @transform_2(%arg0: i32) -> (i32, i32) {
    %c0_i32 = arith.constant 0 : i32
    %c0_i32_0 = arith.constant 0 : i32
    %c0_i32_1 = arith.constant 0 : i32
    return %c0_i32, %c0_i32_0 : i32, i32
  }
  func.func @transform_3(%arg0: i32) -> (i32, i32) {
    %c0_i32 = arith.constant 0 : i32
    %c0_i32_0 = arith.constant 0 : i32
    return %arg0, %c0_i32 : i32, i32
  }
}

</mosaic_0001>

<bundles_post_ra>
// kernel: forward.1
= control target key start
LH: loop header
LB: loop body
LE: loop exit
PB: predicated region body
PF: predicated region fallthrough
CT: control target
= control target key end

     0   :  { %8 = vsyncpa [#allocation4], 0  ;;  %s1726_s0 = inlined_call_operand.vmem [shape: f32[8,64], index: 0, kind: input, shape index: {}]   ;;  %s1727_s1 = inlined_call_operand.hbm [shape: f32[1136,128], index: 1, kind: input, shape index: {}]   ;;  %s1728_s2 = inlined_call_operand.hbm [shape: f32[24,256], index: 2, kind: input, shape index: {}]   ;;  %s1729_s3 = inlined_call_operand.vmem [shape: f32[8,128], index: 3, kind: output, shape index: {}]  }
   0x1   :  { %9 = vsyncpa [#allocation6], 0  ;;  %s1528_s12 = smov [#allocation3]  }
   0x2   :  { %s17_s13 = sshll.u32 %s1528_s12, 4  ;;  %s18_s13 = int_to_ptr.vmem [resolvable:$true] %s17_s13 }
   0x3   :  { %s1492_s14 = scalar_lea.vmem %s18_s13, 18176  ;;  %p1497_p1 = scmp.lt.s32.totalorder %s18_s13, %s18_s13 }
   0x4   :  { %p1493_p0 = scmp.ne.s32.totalorder %s18_s13, %s1492_s14  ;;  %p1498_p2 = scmp.lt.s32.totalorder %s1492_s14, %s1492_s14 }
   0x6   :  { %p1499_p3 = por %p1498_p2, %p1497_p1 }
   0x8   :  { %p1500_p4 = pnand %p1499_p3, %p1493_p0 }
   0xa   :  { %1503 = shalt.err (!%p1500_p4)
}
   0xb   :  { %s1529_s15 = smov 128   ;;  %s1530_s16 = smov 8  }
   0xc   :  { %23 = dma.hbm_to_vmem [thread:$0]  %s1727_s1, 18176, %s18_s13, [#allocation4], %s1529_s15, %s1529_s15, %s1530_s16  }
   0xd   :  { %s1531_s19 = smov [#allocation5]  }
   0xe   :  { %s29_s20 = sshll.u32 %s1531_s19, 4  ;;  %s30_s20 = int_to_ptr.vmem [resolvable:$true] %s29_s20 }
   0xf   :  { %s1512_s21 = scalar_lea.vmem %s30_s20, 768  ;;  %p1517_p6 = scmp.lt.s32.totalorder %s30_s20, %s30_s20 }
  0x10   :  { %p1513_p5 = scmp.ne.s32.totalorder %s30_s20, %s1512_s21  ;;  %p1518_p7 = scmp.lt.s32.totalorder %s1512_s21, %s1512_s21 }
  0x12   :  { %p1519_p8 = por %p1518_p7, %p1517_p6 }
  0x14   :  { %p1520_p9 = pnand %p1519_p8, %p1513_p5 }
  0x16   :  { %1523 = shalt.err (!%p1520_p9)
}
  0x17   :  { %s1532_s22 = smov 256   ;;  %s1533_s23 = smov 16  }
  0x18   :  { %35 = dma.hbm_to_vmem [thread:$0]  %s1728_s2, 768, %s30_s20, [#allocation6], %s1532_s22, %s1532_s22, %s1533_s23  }
  0x19   :  { %1524 = dma.done.wait [#allocation4], 18176  }
  0x1a   :  { %1525 = vsyncadd [#allocation4], 4294949120 }
  0x1b   :  { %1526 = dma.done.wait [#allocation6], 768  }
  0x1c   :  { %1527 = vsyncadd [#allocation6], 4294966528  ;;  %v1534_v0 = vmov 0.0   ;;  %vm1535_vm0 = vmmov 0   ;;  %v51_v1 = vld [vmem:[#allocation3 + $0x38] sm:$0xff]  ;;  %v50_v3 = vld [vmem:[#allocation3 + $0x30] sm:$0xff]  ;;  %v305_v50 = vlaneseq }
  0x1d   :  { %1273 = vmatprep.subr.mxu0 %v1534_v0  ;;  %1292 = vmatprep.subr.mxu1 %v1534_v0  ;;  %v133_v2 = vld [vmem:[#allocation3 + $0x78] sm:$0xff]  ;;  %v132_v4 = vld [vmem:[#allocation3 + $0x70] sm:$0xff]  ;;  %v49_v5 = vld [vmem:[#allocation3 + $0x28] sm:$0xff]  ;;  %vm52_vm1 = vcmask 523264   ;;  %vm435_vm2 = vcmask 1048064   ;;  %vm665_vm3 = vcmask 785920  }
  0x1e   :  { %1289 = vmatprep.mubr.msk.f32.mxu0 %vm1535_vm0, %v1534_v0  ;;  %1308 = vmatprep.mubr.msk.f32.mxu1 %vm1535_vm0, %v1534_v0  ;;  %v131_v6 = vld [vmem:[#allocation3 + $0x68] sm:$0xff]  ;;  %v48_v7 = vld [vmem:[#allocation3 + $0x20] sm:$0xff]  ;;  %v47_v9 = vld [vmem:[#allocation3 + $0x18] sm:$0xff]  ;;  %v306_v51 = vshrl.u32 %v305_v50, 7  ;;  %vm685_vm4 = vcmask 785408   ;;  %s1537_s26 = smov 96  }
  0x1f   :  { %1274 = vmatpush3.msra.mxu0 %v51_v1  ;;  %1293 = vmatpush3.msra.mxu1 %v133_v2  ;;  %v130_v8 = vld [vmem:[#allocation3 + $0x60] sm:$0xff]  ;;  %v129_v10 = vld [vmem:[#allocation3 + $0x58] sm:$0xff]  ;;  %v46_v11 = vld [vmem:[#allocation3 + $0x10] sm:$0xff]  ;;  %vm763_vm5 = vcmask 1048320   ;;  %vm857_vm6 = vcmask 261120   ;;  %s1538_s27 = smov 32  }
  0x20   :  { %1275 = vmatprep.subr.mxu0 %v1534_v0  ;;  %1294 = vmatprep.subr.mxu1 %v1534_v0  ;;  %v128_v12 = vld [vmem:[#allocation3 + $0x50] sm:$0xff]  ;;  %v45_v13 = vld [vmem:[#allocation3 + $0x8] sm:$0xff]  ;;  %v44_v15 = vld [vmem:[#allocation3] sm:$0xff]  ;;  %v307_v53 = vsub.s32 0, %v306_v51  ;;  %vm946_vm7 = vcmask 392448   ;;  %vm960_vm8 = vcmask 392192  }
  0x21   :  { %1276 = vmatpush3.msra.mxu0 %v50_v3  ;;  %1295 = vmatpush3.msra.mxu1 %v132_v4  ;;  %v127_v14 = vld [vmem:[#allocation3 + $0x48] sm:$0xff]  ;;  %v126_v16 = vld [vmem:[#allocation3 + $0x40] sm:$0xff]  ;;  %v42_v17 = vld [vmem:[%s1726_s0] sm:$0xff]  ;;  %s1536_s0 = smov 64   ;;  %s1539_s28 = smov 48   ;;  %vm1038_vm9 = vcmask 523648  }
  0x22   :  { %1277 = vmatprep.subr.mxu0 %v1534_v0  ;;  %1296 = vmatprep.subr.mxu1 %v1534_v0  ;;  %v228_v18 = vld [vmem:[#allocation3 + $0xf8] sm:$0xff]  ;;  %v227_v19 = vld [vmem:[#allocation3 + $0xf0] sm:$0xff]  ;;  %v226_v20 = vld [vmem:[#allocation3 + $0xe8] sm:$0xff] }
  0x23   :  { %1278 = vmatpush3.msra.mxu0 %v49_v5  ;;  %1297 = vmatpush3.msra.mxu1 %v131_v6  ;;  %v225_v21 = vld [vmem:[#allocation3 + $0xe0] sm:$0xff]  ;;  %v224_v22 = vld [vmem:[#allocation3 + $0xd8] sm:$0xff]  ;;  %v223_v23 = vld [vmem:[#allocation3 + $0xd0] sm:$0xff] }
  0x24   :  { %1279 = vmatprep.subr.mxu0 %v1534_v0  ;;  %1298 = vmatprep.subr.mxu1 %v1534_v0  ;;  %v222_v24 = vld [vmem:[#allocation3 + $0xc8] sm:$0xff]  ;;  %v221_v25 = vld [vmem:[#allocation3 + $0xc0] sm:$0xff]  ;;  %v220_v26 = vld [vmem:[#allocation3 + $0xb8] sm:$0xff] }
  0x25   :  { %1280 = vmatpush3.msra.mxu0 %v48_v7  ;;  %1299 = vmatpush3.msra.mxu1 %v130_v8  ;;  %v219_v27 = vld [vmem:[#allocation3 + $0xb0] sm:$0xff]  ;;  %v218_v28 = vld [vmem:[#allocation3 + $0xa8] sm:$0xff]  ;;  %v217_v29 = vld [vmem:[#allocation3 + $0xa0] sm:$0xff] }
  0x26   :  { %1281 = vmatprep.subr.mxu0 %v1534_v0  ;;  %1300 = vmatprep.subr.mxu1 %v1534_v0  ;;  %v216_v30 = vld [vmem:[#allocation3 + $0x98] sm:$0xff]  ;;  %v215_v31 = vld [vmem:[#allocation3 + $0x90] sm:$0xff]  ;;  %v214_v32 = vld [vmem:[#allocation3 + $0x88] sm:$0xff] }
  0x27   :  { %1282 = vmatpush3.msra.mxu0 %v47_v9  ;;  %1301 = vmatpush3.msra.mxu1 %v129_v10  ;;  %v213_v33 = vld [vmem:[#allocation3 + $0x80] sm:$0xff]  ;;  %v349_v34 = vld [vmem:[#allocation3 + $0x178] sm:$0xff]  ;;  %v348_v35 = vld [vmem:[#allocation3 + $0x170] sm:$0xff] }
  0x28   :  { %1283 = vmatprep.subr.mxu0 %v1534_v0  ;;  %1302 = vmatprep.subr.mxu1 %v1534_v0  ;;  %v347_v36 = vld [vmem:[#allocation3 + $0x168] sm:$0xff]  ;;  %v346_v37 = vld [vmem:[#allocation3 + $0x160] sm:$0xff]  ;;  %v345_v38 = vld [vmem:[#allocation3 + $0x158] sm:$0xff] }
  0x29   :  { %1284 = vmatpush3.msra.mxu0 %v46_v11  ;;  %1303 = vmatpush3.msra.mxu1 %v128_v12  ;;  %v344_v39 = vld [vmem:[#allocation3 + $0x150] sm:$0xff]  ;;  %v343_v40 = vld [vmem:[#allocation3 + $0x148] sm:$0xff]  ;;  %v342_v41 = vld [vmem:[#allocation3 + $0x140] sm:$0xff] }
  0x2a   :  { %1285 = vmatprep.subr.mxu0 %v1534_v0  ;;  %1304 = vmatprep.subr.mxu1 %v1534_v0  ;;  %v341_v42 = vld [vmem:[#allocation3 + $0x138] sm:$0xff]  ;;  %v340_v43 = vld [vmem:[#allocation3 + $0x130] sm:$0xff]  ;;  %v339_v44 = vld [vmem:[#allocation3 + $0x128] sm:$0xff] }
  0x2b   :  { %1286 = vmatpush3.msra.mxu0 %v45_v13  ;;  %1305 = vmatpush3.msra.mxu1 %v127_v14  ;;  %v338_v45 = vld [vmem:[#allocation3 + $0x120] sm:$0xff]  ;;  %v337_v46 = vld [vmem:[#allocation3 + $0x118] sm:$0xff]  ;;  %v336_v47 = vld [vmem:[#allocation3 + $0x110] sm:$0xff] }
  0x2c   :  { %1287 = vmatprep.subr.mxu0 %v1534_v0  ;;  %1306 = vmatprep.subr.mxu1 %v1534_v0  ;;  %v335_v48 = vld [vmem:[#allocation3 + $0x108] sm:$0xff]  ;;  %v334_v49 = vld [vmem:[#allocation3 + $0x100] sm:$0xff]  ;;  %v43_v52 = vld [vmem:[#allocation5] ss:$0 sm:$0xff] }
  0x2d   :  { %1288 = vmatpush3.msra.mxu0 %v44_v15  ;;  %1307 = vmatpush3.msra.mxu1 %v126_v16  ;;  %v1626_v56 = vld [vmem:[#allocation5 + $0x5] ss:$8 sm:$0x3]  ;;  %v1628_v61 = vld [vmem:[#allocation5 + $0x6] ss:$8 sm:$0x3] }
  0x2e   :  { %1290 = vmatmul.mubr.msk.f32.vlgmr.msra.gmra.mxu0 %vm52_vm1, %v42_v17  ;;  %1309 = vmatmul.mubr.msk.f32.vlgmr.msra.gmra.mxu1 %vm52_vm1, %v42_v17  ;;  %v445_v63 = vrot.slane %v1626_v56, %v307_v53  ;;  %v208_v1 = vld [vmem:[#allocation5 + $0x1] ss:$0 sm:$0xff]  ;;  %v460_v3 = vrot.slane %v1628_v61, %v307_v53  ;;  %v210_v4 = vld [vmem:[#allocation5 + $0x2] ss:$0 sm:$0xff]  ;;  %v357_v10 = vld [vmem:[#allocation3 + $0x1b8] sm:$0xff] }
  0x2f   :  { %1311 = vmatprep.subr.mxu0 %v1534_v0  ;;  %1343 = vmatprep.mubr.msk.f32.mxu0 %vm1535_vm0, %v1534_v0  ;;  %v356_v11 = vld [vmem:[#allocation3 + $0x1b0] sm:$0xff]  ;;  %v355_v12 = vld [vmem:[#allocation3 + $0x1a8] sm:$0xff]  ;;  %v354_v13 = vld [vmem:[#allocation3 + $0x1a0] sm:$0xff] }
  0x30   :  { %1312 = vmatpush3.msra.mxu0 %v228_v18  ;;  %361 = vmatprep.subr.mxu1 %v1534_v0  ;;  %v353_v14 = vld [vmem:[#allocation3 + $0x198] sm:$0xff]  ;;  %v352_v15 = vld [vmem:[#allocation3 + $0x190] sm:$0xff]  ;;  %v351_v16 = vld [vmem:[#allocation3 + $0x188] sm:$0xff] }
  0x31   :  { %1313 = vmatprep.subr.mxu0 %v1534_v0  ;;  %362 = vmatpush1.msra.mxu1 %v349_v34  ;;  %v350_v17 = vld [vmem:[#allocation3 + $0x180] sm:$0xff]  ;;  %v303_v18 = vld [vmem:[#allocation5 + $0x3] ss:$8 sm:$0x3] }
  0x32   :  { %1314 = vmatpush3.msra.mxu0 %v227_v19  ;;  %363 = vmatprep.subr.mxu1 %v1534_v0  ;;  %v502_v34 = vld [vmem:[#allocation3 + $0x2b8] sm:$0xff] }
  0x33   :  { %1315 = vmatprep.subr.mxu0 %v1534_v0  ;;  %364 = vmatpush1.msra.mxu1 %v348_v35  ;;  %v486_v35 = vld [vmem:[#allocation3 + $0x238] sm:$0xff] }
  0x34   :  { %1316 = vmatpush3.msra.mxu0 %v226_v20  ;;  %365 = vmatprep.subr.mxu1 %v1534_v0  ;;  %v1643_v20 = vsub.s32 1, %v306_v51  ;;  %v494_v50 = vld [vmem:[#allocation3 + $0x278] sm:$0xff] }
  0x35   :  { %1317 = vmatprep.subr.mxu0 %v1534_v0  ;;  %366 = vmatpush1.msra.mxu1 %v347_v36  ;;  %v501_v36 = vld [vmem:[#allocation3 + $0x2b0] sm:$0xff]  ;;  %v478_v51 = vld [vmem:[#allocation3 + $0x1f8] sm:$0xff] }
  0x36   :  { %1318 = vmatpush3.msra.mxu0 %v225_v21  ;;  %367 = vmatprep.subr.mxu1 %v1534_v0 }
  0x37   :  { %1319 = vmatprep.subr.mxu0 %v1534_v0  ;;  %368 = vmatpush1.msra.mxu1 %v346_v37  ;;  %v485_v37 = vld [vmem:[#allocation3 + $0x230] sm:$0xff] }
  0x38   :  { %1320 = vmatpush3.msra.mxu0 %v224_v22  ;;  %369 = vmatprep.subr.mxu1 %v1534_v0  ;;  %v308_v22 = vrot.slane %v303_v18, %v307_v53 }
  0x39   :  { %1321 = vmatprep.subr.mxu0 %v1534_v0  ;;  %370 = vmatpush1.msra.mxu1 %v345_v38  ;;  %v500_v38 = vld [vmem:[#allocation3 + $0x2a8] sm:$0xff] }
  0x3a   :  { %1322 = vmatpush3.msra.mxu0 %v223_v23  ;;  %371 = vmatprep.subr.mxu1 %v1534_v0  ;;  %v318_v23 = vld [vmem:[#allocation5 + $0x4] ss:$8 sm:$0x3] }
  0x3b   :  { %1323 = vmatprep.subr.mxu0 %v1534_v0  ;;  %372 = vmatpush1.msra.mxu1 %v344_v39  ;;  %v484_v39 = vld [vmem:[#allocation3 + $0x228] sm:$0xff] }
  0x3c   :  { %1324 = vmatpush3.msra.mxu0 %v222_v24  ;;  %373 = vmatprep.subr.mxu1 %v1534_v0  ;;  %v312_v24 = vrot.slane %v303_v18, %v1643_v20  ;;  %v583_v18 = vld [vmem:[#allocation3 + $0x2d8] sm:$0xff] }
  0x3d   :  { %1325 = vmatprep.subr.mxu0 %v1534_v0  ;;  %374 = vmatpush1.msra.mxu1 %v343_v40  ;;  %v499_v40 = vld [vmem:[#allocation3 + $0x2a0] sm:$0xff] }
  0x3e   :  { %1326 = vmatpush3.msra.mxu0 %v221_v25  ;;  %375 = vmatprep.subr.mxu1 %v1534_v0 }
  0x3f   :  { %1327 = vmatprep.subr.mxu0 %v1534_v0  ;;  %376 = vmatpush1.msra.mxu1 %v342_v41  ;;  %v483_v41 = vld [vmem:[#allocation3 + $0x220] sm:$0xff] }
  0x40   :  { %1328 = vmatpush3.msra.mxu0 %v220_v26  ;;  %377 = vmatprep.subr.mxu1 %v1534_v0  ;;  %v323_v26 = vrot.slane %v318_v23, %v307_v53  ;;  %v477_v53 = vld [vmem:[#allocation3 + $0x1f0] sm:$0xff] }
  0x41   :  { %1329 = vmatprep.subr.mxu0 %v1534_v0  ;;  %378 = vmatpush1.msra.mxu1 %v341_v42  ;;  %v498_v42 = vld [vmem:[#allocation3 + $0x298] sm:$0xff] }
  0x42   :  { %1330 = vmatpush3.msra.mxu0 %v219_v27  ;;  %379 = vmatprep.subr.mxu1 %v1534_v0  ;;  %v327_v27 = vrot.slane %v318_v23, %v1643_v20 }
  0x43   :  { %1331 = vmatprep.subr.mxu0 %v1534_v0  ;;  %380 = vmatpush1.msra.mxu1 %v340_v43  ;;  %v482_v43 = vld [vmem:[#allocation3 + $0x218] sm:$0xff] }
  0x44   :  { %1332 = vmatpush3.msra.mxu0 %v218_v28  ;;  %381 = vmatprep.subr.mxu1 %v1534_v0 }
  0x45   :  { %1333 = vmatprep.subr.mxu0 %v1534_v0  ;;  %382 = vmatpush1.msra.mxu1 %v339_v44  ;;  %v497_v44 = vld [vmem:[#allocation3 + $0x290] sm:$0xff] }
  0x46   :  { %1334 = vmatpush3.msra.mxu0 %v217_v29  ;;  %383 = vmatprep.subr.mxu1 %v1534_v0 }
  0x47   :  { %1335 = vmatprep.subr.mxu0 %v1534_v0  ;;  %384 = vmatpush1.msra.mxu1 %v338_v45  ;;  %v481_v45 = vld [vmem:[#allocation3 + $0x210] sm:$0xff] }
  0x48   :  { %1336 = vmatpush3.msra.mxu0 %v216_v30  ;;  %385 = vmatprep.subr.mxu1 %v1534_v0 }
  0x49   :  { %1337 = vmatprep.subr.mxu0 %v1534_v0  ;;  %386 = vmatpush1.msra.mxu1 %v337_v46  ;;  %v496_v46 = vld [vmem:[#allocation3 + $0x288] sm:$0xff] }
  0x4a   :  { %1338 = vmatpush3.msra.mxu0 %v215_v31  ;;  %387 = vmatprep.subr.mxu1 %v1534_v0 }
  0x4b   :  { %1339 = vmatprep.subr.mxu0 %v1534_v0  ;;  %388 = vmatpush1.msra.mxu1 %v336_v47  ;;  %v480_v47 = vld [vmem:[#allocation3 + $0x208] sm:$0xff] }
  0x4c   :  { %1340 = vmatpush3.msra.mxu0 %v214_v32  ;;  %389 = vmatprep.subr.mxu1 %v1534_v0 }
  0x4d   :  { %1341 = vmatprep.subr.mxu0 %v1534_v0  ;;  %390 = vmatpush1.msra.mxu1 %v335_v48  ;;  %v495_v48 = vld [vmem:[#allocation3 + $0x280] sm:$0xff] }
  0x4e   :  { %1342 = vmatpush3.msra.mxu0 %v213_v33  ;;  %391 = vmatprep.subr.mxu1 %v1534_v0 }
  0x4f   :  { %392 = vmatpush1.msra.mxu1 %v334_v49  ;;  %1178 = vmatprep.subr.mxu0 %v502_v34  ;;  %v479_v49 = vld [vmem:[#allocation3 + $0x200] sm:$0xff]  ;;  %v680_v34 = vld [vmem:[#allocation3 + $0x338] sm:$0xff] }
  0x50   :  { %409 = vmatprep.subr.mxu1 %v1534_v0 }
  0x51   :  { %410 = vmatpush2.msra.mxu1 %v357_v10  ;;  %v464_v10 = vrot.slane %v1628_v61, %v1643_v20  ;;  %v584_v61 = vld [vmem:[#allocation3 + $0x2e0] sm:$0xff] }
  0x52   :  { %411 = vmatprep.subr.mxu1 %v1534_v0 }
  0x53   :  { %412 = vmatpush2.msra.mxu1 %v356_v11 }
  0x54   :  { %413 = vmatprep.subr.mxu1 %v1534_v0 }
  0x55   :  { %414 = vmatpush2.msra.mxu1 %v355_v12 }
  0x56   :  { %415 = vmatprep.subr.mxu1 %v1534_v0 }
  0x57   :  { %416 = vmatpush2.msra.mxu1 %v354_v13 }
  0x58   :  { %417 = vmatprep.subr.mxu1 %v1534_v0 }
  0x59   :  { %418 = vmatpush2.msra.mxu1 %v353_v14 }
  0x5a   :  { %419 = vmatprep.subr.mxu1 %v1534_v0 }
  0x5b   :  { %420 = vmatpush2.msra.mxu1 %v352_v15 }
  0x5c   :  { %421 = vmatprep.subr.mxu1 %v1534_v0 }
  0x5d   :  { %422 = vmatpush2.msra.mxu1 %v351_v16  ;;  %v587_v16 = vld [vmem:[#allocation3 + $0x2f8] sm:$0xff] }
  0x5e   :  { %423 = vmatprep.subr.mxu1 %v1534_v0 }
  0x5f   :  { %424 = vmatpush2.msra.mxu1 %v350_v17  ;;  %v586_v17 = vld [vmem:[#allocation3 + $0x2f0] sm:$0xff] }
  0x60   :  { %1346 = vmatprep.subr.mxu1 %v1534_v0 }
  0xee   :  { %v122_v54 = vpop.f32.mrf.mxu0  ;;  %v200_v55 = vpop.f32.mrf.mxu1 }
  0xef   :  { %v123_v57 = vadd.f32 %v122_v54, %v43_v52  ;;  %v201_v58 = vadd.f32 %v200_v55, %v43_v52  ;;  %v493_v52 = vld [vmem:[#allocation3 + $0x270] sm:$0xff]  ;;  %v492_v54 = vld [vmem:[#allocation3 + $0x268] sm:$0xff] }
  0xf0   :  { %v1291_v59 = vpop.f32.mrf.mxu0  ;;  %v1310_v60 = vpop.f32.mrf.mxu1  ;;  %v476_v55 = vld [vmem:[#allocation3 + $0x1e8] sm:$0xff] }
  0xf1   :  { %v204_v62 = vmax.f32 %v123_v57, %v201_v58  ;;  %v491_v57 = vld [vmem:[#allocation3 + $0x260] sm:$0xff]  ;;  %v490_v59 = vld [vmem:[#allocation3 + $0x258] sm:$0xff] }
  0xf2   :  { %v475_v58 = vld [vmem:[#allocation3 + $0x1e0] sm:$0xff]  ;;  %v474_v60 = vld [vmem:[#allocation3 + $0x1d8] sm:$0xff] }
  0xf3   :  { %v205_v2 = vmax.f32 %v204_v62, 0.0  ;;  %v489_v62 = vld [vmem:[#allocation3 + $0x250] sm:$0xff] }
  0xf5   :  { %206 = vst [vmem:[#allocation2] sm:$0xff] %v205_v2  ;;  %v209_v5 = vmul.f32 %v208_v1, %v205_v2  ;;  %v452_v6 = vmul.f32 %v445_v63, %v205_v2  ;;  %v315_v25 = vmul.f32 %v308_v22, %v205_v2  ;;  %v473_v63 = vld [vmem:[#allocation3 + $0x1d0] sm:$0xff]  ;;  %v488_v1 = vld [vmem:[#allocation3 + $0x248] sm:$0xff] }
  0xf6   :  { %v472_v2 = vld [vmem:[#allocation3 + $0x1c8] sm:$0xff] }
  0xf7   :  { %v211_v7 = vadd.f32 %v210_v4, %v209_v5  ;;  %v1632_v8 = vadd.f32 %v460_v3, %v452_v6  ;;  %v330_v30 = vadd.f32 %v323_v26, %v315_v25  ;;  %v487_v3 = vld [vmem:[#allocation3 + $0x240] sm:$0xff] }
  0xf8   :  { %v471_v4 = vld [vmem:[#allocation3 + $0x1c0] sm:$0xff] }
  0xf9   :  { %v212_v9 = vmax.f32 %v211_v7, 0.0  ;;  %v332_v33 = vmax.f32 %v330_v30, 0.0  ;;  %v469_v15 = vmax.f32 %v1632_v8, 0.0  ;;  %v582_v8 = vld [vmem:[#allocation3 + $0x2d0] sm:$0xff]  ;;  %v577_v26 = vld [vmem:[#allocation5 + $0x10] ss:$0 sm:$0xff] }
  0xfa   :  { %v684_v30 = vld [vmem:[#allocation3 + $0x358] sm:$0xff] }
  0xfb   :  { %1344 = vmatmul.mubr.f32.vlgmr.msra.gmra.mxu0 %v212_v9  ;;  %v449_v9 = vrot.slane %v1626_v56, %v1643_v20  ;;  %v585_v56 = vld [vmem:[#allocation3 + $0x2e8] sm:$0xff]  ;;  %v580_v20 = vld [vmem:[#allocation3 + $0x2c0] sm:$0xff] }
  0xfc   :  { %1179 = vmatpush3.msra.mxu0 %v486_v35  ;;  %v679_v35 = vld [vmem:[#allocation3 + $0x330] sm:$0xff] }
  0xfd   :  { %1180 = vmatprep.subr.mxu0 %v501_v36  ;;  %v678_v36 = vld [vmem:[#allocation3 + $0x328] sm:$0xff] }
  0xfe   :  { %1181 = vmatpush3.msra.mxu0 %v485_v37  ;;  %v677_v37 = vld [vmem:[#allocation3 + $0x320] sm:$0xff] }
  0xff   :  { %1182 = vmatprep.subr.mxu0 %v500_v38  ;;  %v676_v38 = vld [vmem:[#allocation3 + $0x318] sm:$0xff] }
 0x100   :  { %1183 = vmatpush3.msra.mxu0 %v484_v39  ;;  %v675_v39 = vld [vmem:[#allocation3 + $0x310] sm:$0xff] }
 0x101   :  { %1184 = vmatprep.subr.mxu0 %v499_v40  ;;  %v674_v40 = vld [vmem:[#allocation3 + $0x308] sm:$0xff] }
 0x102   :  { %1185 = vmatpush3.msra.mxu0 %v483_v41  ;;  %v673_v41 = vld [vmem:[#allocation3 + $0x300] sm:$0xff] }
 0x103   :  { %1186 = vmatprep.subr.mxu0 %v498_v42 }
 0x104   :  { %1187 = vmatpush3.msra.mxu0 %v482_v43 }
 0x105   :  { %1188 = vmatprep.subr.mxu0 %v497_v44 }
 0x106   :  { %1189 = vmatpush3.msra.mxu0 %v481_v45  ;;  %v668_v45 = vld [vmem:[#allocation5 + $0x11] ss:$0 sm:$0xff] }
 0x107   :  { %1190 = vmatprep.subr.mxu0 %v496_v46 }
 0x108   :  { %1191 = vmatpush3.msra.mxu0 %v480_v47  ;;  %v670_v47 = vld [vmem:[#allocation5 + $0x12] ss:$0 sm:$0xff] }
 0x109   :  { %1192 = vmatprep.subr.mxu0 %v495_v48 }
 0x10a   :  { %1193 = vmatpush3.msra.mxu0 %v479_v49 }
 0x10b   :  { %1194 = vmatprep.subr.mxu0 %v494_v50 }
 0x10c   :  { %1195 = vmatpush3.msra.mxu0 %v478_v51  ;;  %v786_v51 = vld [vmem:[#allocation3 + $0x3d8] sm:$0xff] }
 0x10d   :  { %1196 = vmatprep.subr.mxu0 %v493_v52  ;;  %v785_v52 = vld [vmem:[#allocation3 + $0x3d0] sm:$0xff] }
 0x10e   :  { %1197 = vmatpush3.msra.mxu0 %v477_v53  ;;  %v784_v53 = vld [vmem:[#allocation3 + $0x3c8] sm:$0xff] }
 0x10f   :  { %1198 = vmatprep.subr.mxu0 %v492_v54  ;;  %v783_v54 = vld [vmem:[#allocation3 + $0x3c0] sm:$0xff] }
 0x110   :  { %1199 = vmatpush3.msra.mxu0 %v476_v55  ;;  %v782_v55 = vld [vmem:[#allocation3 + $0x3b8] sm:$0xff] }
 0x111   :  { %1200 = vmatprep.subr.mxu0 %v491_v57  ;;  %v781_v57 = vld [vmem:[#allocation3 + $0x3b0] sm:$0xff] }
 0x112   :  { %1201 = vmatpush3.msra.mxu0 %v475_v58  ;;  %v780_v58 = vld [vmem:[#allocation3 + $0x3a8] sm:$0xff] }
 0x113   :  { %1202 = vmatprep.subr.mxu0 %v490_v59  ;;  %v779_v59 = vld [vmem:[#allocation3 + $0x3a0] sm:$0xff] }
 0x114   :  { %1203 = vmatpush3.msra.mxu0 %v474_v60  ;;  %v778_v60 = vld [vmem:[#allocation3 + $0x398] sm:$0xff] }
 0x115   :  { %1204 = vmatprep.subr.mxu0 %v489_v62  ;;  %v777_v62 = vld [vmem:[#allocation3 + $0x390] sm:$0xff] }
 0x116   :  { %1205 = vmatpush3.msra.mxu0 %v473_v63  ;;  %v776_v63 = vld [vmem:[#allocation3 + $0x388] sm:$0xff] }
 0x117   :  { %1206 = vmatprep.subr.mxu0 %v488_v1  ;;  %v775_v1 = vld [vmem:[#allocation3 + $0x380] sm:$0xff] }
 0x118   :  { %1207 = vmatpush3.msra.mxu0 %v472_v2  ;;  %v774_v2 = vld [vmem:[#allocation3 + $0x378] sm:$0xff] }
 0x119   :  { %1208 = vmatprep.subr.mxu0 %v487_v3  ;;  %v773_v3 = vld [vmem:[#allocation3 + $0x370] sm:$0xff] }
 0x11a   :  { %1209 = vmatpush3.msra.mxu0 %v471_v4  ;;  %v772_v4 = vld [vmem:[#allocation3 + $0x368] sm:$0xff] }
 0x11b   :  { %1365 = vmatprep.subr.mxu0 %v1534_v0 }
 0x1bb   :  { %v295_v19 = vpop.f32.mrf.mxu0 }
 0x1bc   :  { %299 = vst.msk [vmem:[#allocation2 + $0x8] sm:$0xff] %vm52_vm1, %v295_v19  ;;  %v581_v19 = vld [vmem:[#allocation3 + $0x2c8] sm:$0xff] }
 0x1bd   :  { %v1345_v21 = vpop.f32.mrf.mxu0 }
 0x1c3   :  { %v301_v28 = vld [vmem:[#allocation2 + $0x8] sm:$0xff] }
 0x1c4   :  { %v316_v29 = vmul.f32 %v312_v24, %v301_v28  ;;  %v575_v24 = vld [vmem:[#allocation5 + $0x7] ss:$0 sm:$0xff] }
 0x1c6   :  { %v331_v31 = vadd.f32 %v327_v27, %v316_v29 }
 0x1c8   :  { %v333_v32 = vmax.f32 %v331_v31, 0.0  ;;  %v683_v31 = vld [vmem:[#allocation3 + $0x350] sm:$0xff] }
 0x1ca   :  { %1137 = vmatprep.mubr.msk.f32.mxu1 %vm52_vm1, %v333_v32  ;;  %v682_v32 = vld [vmem:[#allocation3 + $0x348] sm:$0xff] }
 0x1cb   :  { %426 = vmatmul.mubr.f32.vlgmr.msra.gmra.mxu1 %v332_v33  ;;  %v681_v33 = vld [vmem:[#allocation3 + $0x340] sm:$0xff] }
 0x1cc   :  { %1362 = vmatprep.mubr.msk.f32.mxu1 %vm1535_vm0, %v1534_v0  ;;  %1347 = vmatpush3.msra.mxu1 %v587_v16  ;;  %v868_v16 = vld [vmem:[#allocation3 + $0x3f8] sm:$0xff] }
 0x1cd   :  { %1348 = vmatprep.subr.mxu1 %v1534_v0 }
 0x1ce   :  { %1349 = vmatpush3.msra.mxu1 %v586_v17  ;;  %v867_v17 = vld [vmem:[#allocation3 + $0x3f0] sm:$0xff] }
 0x1cf   :  { %1350 = vmatprep.subr.mxu1 %v1534_v0 }
 0x1d0   :  { %1351 = vmatpush3.msra.mxu1 %v585_v56  ;;  %v866_v56 = vld [vmem:[#allocation3 + $0x3e8] sm:$0xff] }
 0x1d1   :  { %1352 = vmatprep.subr.mxu1 %v1534_v0 }
 0x1d2   :  { %1353 = vmatpush3.msra.mxu1 %v584_v61  ;;  %v865_v61 = vld [vmem:[#allocation3 + $0x3e0] sm:$0xff] }
 0x1d3   :  { %1354 = vmatprep.subr.mxu1 %v1534_v0 }
 0x1d4   :  { %1355 = vmatpush3.msra.mxu1 %v583_v18 }
 0x1d5   :  { %1356 = vmatprep.subr.mxu1 %v1534_v0 }
 0x1d6   :  { %1357 = vmatpush3.msra.mxu1 %v582_v8 }
 0x1d7   :  { %1358 = vmatprep.subr.mxu1 %v1534_v0 }
 0x1d8   :  { %1359 = vmatpush3.msra.mxu1 %v581_v19  ;;  %v860_v19 = vld [vmem:[#allocation5 + $0x15] ss:$0 sm:$0xff] }
 0x1d9   :  { %1360 = vmatprep.subr.mxu1 %v1534_v0 }
 0x1da   :  { %1361 = vmatpush3.msra.mxu1 %v580_v20 }
 0x1db   :  { %1392 = vmatprep.subr.mxu1 %v1534_v0 }
 0x28b   :  { %v427_v5 = vpop.f32.mrf.mxu1 }
 0x28c   :  { %432 = vrot.lane.b32.xlu0 %v427_v5, %s1536_s0  ;;  %v771_v5 = vld [vmem:[#allocation3 + $0x360] sm:$0xff] }
 0x28d   :  { %v429_v6 = vpop.f32.mrf.mxu1 }
 0x2fe   :  { %v433_v7 = vpop.permute.xlu0 %432 }
 0x2ff   :  { %436 = vst.msk [vmem:[#allocation2 + $0x8] sm:$0xff] %vm435_vm2, %v433_v7 }
 0x306   :  { %v438_v11 = vld [vmem:[#allocation2 + $0x8] sm:$0xff] }
 0x307   :  { %v453_v12 = vmul.f32 %v449_v9, %v438_v11 }
 0x309   :  { %v468_v13 = vadd.f32 %v464_v10, %v453_v12  ;;  %v766_v10 = vld [vmem:[#allocation5 + $0x13] ss:$0 sm:$0xff]  ;;  %v768_v12 = vld [vmem:[#allocation5 + $0x14] ss:$0 sm:$0xff] }
 0x30b   :  { %v470_v14 = vmax.f32 %v468_v13, 0.0 }
 0x30d   :  { %567 = vmatprep.mubr.f32.mxu0 %v470_v14 }
 0x30e   :  { %568 = vmatmul.mubr.f32.vlgmr.msra.gmra.mxu0 %v469_v15 }
 0x30f   :  { %1389 = vmatprep.mubr.msk.f32.mxu0 %vm1535_vm0, %v1534_v0  ;;  %1366 = vmatpush3.msra.mxu0 %v684_v30  ;;  %v954_v30 = vld [vmem:[#allocation3 + $0x400] sm:$0xff] }
 0x310   :  { %1367 = vmatprep.subr.mxu0 %v1534_v0 }
 0x311   :  { %1368 = vmatpush3.msra.mxu0 %v683_v31 }
 0x312   :  { %1369 = vmatprep.subr.mxu0 %v1534_v0 }
 0x313   :  { %1370 = vmatpush3.msra.mxu0 %v682_v32 }
 0x314   :  { %1371 = vmatprep.subr.mxu0 %v1534_v0 }
 0x315   :  { %1372 = vmatpush3.msra.mxu0 %v681_v33 }
 0x316   :  { %1373 = vmatprep.subr.mxu0 %v1534_v0 }
 0x317   :  { %1374 = vmatpush3.msra.mxu0 %v680_v34  ;;  %v949_v34 = vld [vmem:[#allocation5 + $0x17] ss:$0 sm:$0xff] }
 0x318   :  { %1375 = vmatprep.subr.mxu0 %v1534_v0 }
 0x319   :  { %1376 = vmatpush3.msra.mxu0 %v679_v35 }
 0x31a   :  { %1377 = vmatprep.subr.mxu0 %v1534_v0 }
 0x31b   :  { %1378 = vmatpush3.msra.mxu0 %v678_v36  ;;  %v951_v36 = vld [vmem:[#allocation5 + $0x20] ss:$0 sm:$0xff] }
 0x31c   :  { %1379 = vmatprep.subr.mxu0 %v1534_v0 }
 0x31d   :  { %1380 = vmatpush3.msra.mxu0 %v677_v37 }
 0x31e   :  { %1381 = vmatprep.subr.mxu0 %v1534_v0 }
 0x31f   :  { %1382 = vmatpush3.msra.mxu0 %v676_v38 }
 0x320   :  { %1383 = vmatprep.subr.mxu0 %v1534_v0 }
 0x321   :  { %1384 = vmatpush3.msra.mxu0 %v675_v39 }
 0x322   :  { %1385 = vmatprep.subr.mxu0 %v1534_v0 }
 0x323   :  { %1386 = vmatpush3.msra.mxu0 %v674_v40  ;;  %v1053_v40 = vld [vmem:[#allocation3 + $0x468] sm:$0xff] }
 0x324   :  { %1387 = vmatprep.subr.mxu0 %v1534_v0 }
 0x325   :  { %1388 = vmatpush3.msra.mxu0 %v673_v41  ;;  %v1052_v41 = vld [vmem:[#allocation3 + $0x460] sm:$0xff] }
 0x326   :  { %1427 = vmatprep.subr.mxu0 %v1534_v0 }
 0x3ce   :  { %v1210_v21 = vpop.f32.mrf.mxu0 }
 0x3d0   :  { %v1211_v22 = vpop.f32.mrf.mxu0 }
 0x3d1   :  { %v1212_v23 = vadd.f32 %v1211_v22, %v1210_v21  ;;  %v862_v21 = vld [vmem:[#allocation5 + $0x16] ss:$0 sm:$0xff] }
 0x3d3   :  { %573 = vst.msk [vmem:[#allocation2] sm:$0xff] %vm52_vm1, %v1212_v23 }
 0x3da   :  { %v574_v25 = vld [vmem:[#allocation2] sm:$0xff] }
 0x3db   :  { %v576_v27 = vmul.f32 %v575_v24, %v574_v25  ;;  %v959_v25 = vld [vmem:[#allocation3 + $0x428] sm:$0xff] }
 0x3dd   :  { %v578_v28 = vadd.f32 %v577_v26, %v576_v27  ;;  %v958_v26 = vld [vmem:[#allocation3 + $0x420] sm:$0xff]  ;;  %v957_v27 = vld [vmem:[#allocation3 + $0x418] sm:$0xff] }
 0x3df   :  { %v579_v29 = vmax.f32 %v578_v28, 0.0  ;;  %v956_v28 = vld [vmem:[#allocation3 + $0x410] sm:$0xff] }
 0x3e1   :  { %1363 = vmatmul.mubr.msk.f32.vlgmr.msra.gmra.mxu1 %vm52_vm1, %v579_v29  ;;  %v955_v29 = vld [vmem:[#allocation3 + $0x408] sm:$0xff] }
 0x3e2   :  { %1424 = vmatprep.mubr.msk.f32.mxu1 %vm1535_vm0, %v1534_v0  ;;  %1393 = vmatpush3.msra.mxu1 %v786_v51  ;;  %v1041_v51 = vld [vmem:[#allocation5 + $0x21] ss:$0 sm:$0xff] }
 0x3e3   :  { %1394 = vmatprep.subr.mxu1 %v1534_v0 }
 0x3e4   :  { %1395 = vmatpush3.msra.mxu1 %v785_v52 }
 0x3e5   :  { %1396 = vmatprep.subr.mxu1 %v1534_v0 }
 0x3e6   :  { %1397 = vmatpush3.msra.mxu1 %v784_v53  ;;  %v1043_v53 = vld [vmem:[#allocation5 + $0x22] ss:$0 sm:$0xff] }
 0x3e7   :  { %1398 = vmatprep.subr.mxu1 %v1534_v0 }
 0x3e8   :  { %1399 = vmatpush3.msra.mxu1 %v783_v54 }
 0x3e9   :  { %1400 = vmatprep.subr.mxu1 %v1534_v0 }
 0x3ea   :  { %1401 = vmatpush3.msra.mxu1 %v782_v55 }
 0x3eb   :  { %1402 = vmatprep.subr.mxu1 %v1534_v0 }
 0x3ec   :  { %1403 = vmatpush3.msra.mxu1 %v781_v57 }
 0x3ed   :  { %1404 = vmatprep.subr.mxu1 %v1534_v0 }
 0x3ee   :  { %1405 = vmatpush3.msra.mxu1 %v780_v58  ;;  %v1054_v58 = vld [vmem:[#allocation5 + $0x23] ss:$0 sm:$0xff] }
 0x3ef   :  { %1406 = vmatprep.subr.mxu1 %v1534_v0 }
 0x3f0   :  { %1407 = vmatpush3.msra.mxu1 %v779_v59 }
 0x3f1   :  { %1408 = vmatprep.subr.mxu1 %v1534_v0 }
 0x3f2   :  { %1409 = vmatpush3.msra.mxu1 %v778_v60 }
 0x3f3   :  { %1410 = vmatprep.subr.mxu1 %v1534_v0 }
 0x3f4   :  { %1411 = vmatpush3.msra.mxu1 %v777_v62 }
 0x3f5   :  { %1412 = vmatprep.subr.mxu1 %v1534_v0 }
 0x3f6   :  { %1413 = vmatpush3.msra.mxu1 %v776_v63 }
 0x3f7   :  { %1414 = vmatprep.subr.mxu1 %v1534_v0 }
 0x3f8   :  { %1415 = vmatpush3.msra.mxu1 %v775_v1 }
 0x3f9   :  { %1416 = vmatprep.subr.mxu1 %v1534_v0 }
 0x3fa   :  { %1417 = vmatpush3.msra.mxu1 %v774_v2 }
 0x3fb   :  { %1418 = vmatprep.subr.mxu1 %v1534_v0 }
 0x3fc   :  { %1419 = vmatpush3.msra.mxu1 %v773_v3 }
 0x3fd   :  { %1420 = vmatprep.subr.mxu1 %v1534_v0 }
 0x3fe   :  { %1421 = vmatpush3.msra.mxu1 %v772_v4 }
 0x3ff   :  { %1422 = vmatprep.subr.mxu1 %v1534_v0 }
 0x400   :  { %1423 = vmatpush3.msra.mxu1 %v771_v5 }
 0x401   :  { %1453 = vmatprep.subr.mxu1 %v1534_v0 }
 0x4a1   :  { %v657_v42 = vpop.f32.mrf.mxu1 }
 0x4a2   :  { %662 = vrot.lane.b32.xlu0 %v657_v42, %s1536_s0  ;;  %v1051_v42 = vld [vmem:[#allocation3 + $0x458] sm:$0xff] }
 0x4a3   :  { %v1364_v43 = vpop.f32.mrf.mxu1 }
 0x4a4   :  { %v1050_v43 = vld [vmem:[#allocation3 + $0x450] sm:$0xff] }
 0x514   :  { %v663_v44 = vpop.permute.xlu0 %662 }
 0x515   :  { %666 = vst.msk [vmem:[#allocation2] sm:$0xff] %vm665_vm3, %v663_v44  ;;  %v1049_v44 = vld [vmem:[#allocation3 + $0x448] sm:$0xff] }
 0x51c   :  { %v667_v46 = vld [vmem:[#allocation2] sm:$0xff] }
 0x51d   :  { %v669_v48 = vmul.f32 %v668_v45, %v667_v46  ;;  %v1048_v45 = vld [vmem:[#allocation3 + $0x440] sm:$0xff]  ;;  %v1047_v46 = vld [vmem:[#allocation3 + $0x438] sm:$0xff] }
 0x51f   :  { %v671_v49 = vadd.f32 %v670_v47, %v669_v48  ;;  %v1046_v47 = vld [vmem:[#allocation3 + $0x430] sm:$0xff] }
 0x521   :  { %v672_v50 = vmax.f32 %v671_v49, 0.0 }
 0x523   :  { %1390 = vmatmul.mubr.msk.f32.vlgmr.msra.gmra.mxu0 %vm685_vm4, %v672_v50 }
 0x524   :  { %1435 = vmatprep.mubr.msk.f32.mxu0 %vm1535_vm0, %v1534_v0  ;;  %1428 = vmatpush3.msra.mxu0 %v868_v16 }
 0x525   :  { %1429 = vmatprep.subr.mxu0 %v1534_v0 }
 0x526   :  { %1430 = vmatpush3.msra.mxu0 %v867_v17 }
 0x527   :  { %1431 = vmatprep.subr.mxu0 %v1534_v0 }
 0x528   :  { %1432 = vmatpush3.msra.mxu0 %v866_v56 }
 0x529   :  { %1433 = vmatprep.subr.mxu0 %v1534_v0 }
 0x52a   :  { %1434 = vmatpush3.msra.mxu0 %v865_v61 }
 0x52b   :  { %1438 = vmatprep.subr.mxu0 %v1534_v0 }
 0x5e3   :  { %v755_v6 = vpop.f32.mrf.mxu0 }
 0x5e4   :  { %760 = vrot.lane.b32.xlu1 %v755_v6, %s1537_s26 }
 0x5e5   :  { %v1391_v7 = vpop.f32.mrf.mxu0 }
 0x656   :  { %v761_v9 = vpop.permute.xlu1 %760 }
 0x657   :  { %764 = vst.msk [vmem:[#allocation2] sm:$0xff] %vm763_vm5, %v761_v9 }
 0x65e   :  { %v765_v11 = vld [vmem:[#allocation2] sm:$0xff] }
 0x65f   :  { %v767_v13 = vmul.f32 %v766_v10, %v765_v11 }
 0x661   :  { %v769_v14 = vadd.f32 %v768_v12, %v767_v13 }
 0x663   :  { %v770_v15 = vmax.f32 %v769_v14, 0.0 }
 0x665   :  { %1425 = vmatmul.mubr.f32.vlgmr.msra.gmra.mxu1 %v770_v15 }
 0x666   :  { %1469 = vmatprep.mubr.msk.f32.mxu1 %vm1535_vm0, %v1534_v0  ;;  %1454 = vmatpush3.msra.mxu1 %v1053_v40 }
 0x667   :  { %1455 = vmatprep.subr.mxu1 %v1534_v0 }
 0x668   :  { %1456 = vmatpush3.msra.mxu1 %v1052_v41 }
 0x669   :  { %1457 = vmatprep.subr.mxu1 %v1534_v0 }
 0x66a   :  { %1458 = vmatpush3.msra.mxu1 %v1051_v42 }
 0x66b   :  { %1459 = vmatprep.subr.mxu1 %v1534_v0 }
 0x66c   :  { %1460 = vmatpush3.msra.mxu1 %v1050_v43 }
 0x66d   :  { %1461 = vmatprep.subr.mxu1 %v1534_v0 }
 0x66e   :  { %1462 = vmatpush3.msra.mxu1 %v1049_v44 }
 0x66f   :  { %1463 = vmatprep.subr.mxu1 %v1534_v0 }
 0x670   :  { %1464 = vmatpush3.msra.mxu1 %v1048_v45 }
 0x671   :  { %1465 = vmatprep.subr.mxu1 %v1534_v0 }
 0x672   :  { %1466 = vmatpush3.msra.mxu1 %v1047_v46 }
 0x673   :  { %1467 = vmatprep.subr.mxu1 %v1534_v0 }
 0x674   :  { %1468 = vmatpush3.msra.mxu1 %v1046_v47 }
 0x725   :  { %v853_v18 = vpop.f32.mrf.mxu1 }
 0x726   :  { %858 = vst.msk [vmem:[#allocation2] sm:$0xff] %vm857_vm6, %v853_v18 }
 0x727   :  { %v1426_v8 = vpop.f32.mrf.mxu1 }
 0x72d   :  { %v859_v20 = vld [vmem:[#allocation2] sm:$0xff] }
 0x72e   :  { %v861_v22 = vmul.f32 %v860_v19, %v859_v20 }
 0x730   :  { %v863_v23 = vadd.f32 %v862_v21, %v861_v22 }
 0x732   :  { %v864_v24 = vmax.f32 %v863_v23, 0.0 }
 0x734   :  { %1436 = vmatmul.mubr.msk.f32.vlgmr.msra.gmra.mxu0 %vm857_vm6, %v864_v24 }
 0x735   :  { %1450 = vmatprep.mubr.msk.f32.mxu0 %vm1535_vm0, %v1534_v0  ;;  %1439 = vmatpush3.msra.mxu0 %v959_v25 }
 0x736   :  { %1440 = vmatprep.subr.mxu0 %v1534_v0 }
 0x737   :  { %1441 = vmatpush3.msra.mxu0 %v958_v26 }
 0x738   :  { %1442 = vmatprep.subr.mxu0 %v1534_v0 }
 0x739   :  { %1443 = vmatpush3.msra.mxu0 %v957_v27 }
 0x73a   :  { %1444 = vmatprep.subr.mxu0 %v1534_v0 }
 0x73b   :  { %1445 = vmatpush3.msra.mxu0 %v956_v28 }
 0x73c   :  { %1446 = vmatprep.subr.mxu0 %v1534_v0 }
 0x73d   :  { %1447 = vmatpush3.msra.mxu0 %v955_v29 }
 0x73e   :  { %1448 = vmatprep.subr.mxu0 %v1534_v0 }
 0x73f   :  { %1449 = vmatpush3.msra.mxu0 %v954_v30 }
 0x7f4   :  { %v938_v31 = vpop.f32.mrf.mxu0 }
 0x7f5   :  { %943 = vrot.lane.b32.xlu1 %v938_v31, %s1538_s27 }
 0x7f6   :  { %v1437_v32 = vpop.f32.mrf.mxu0 }
 0x867   :  { %v944_v33 = vpop.permute.xlu1 %943 }
 0x868   :  { %947 = vst.msk [vmem:[#allocation2] sm:$0xff] %vm946_vm7, %v944_v33 }
 0x86f   :  { %v948_v35 = vld [vmem:[#allocation2] sm:$0xff] }
 0x870   :  { %v950_v37 = vmul.f32 %v949_v34, %v948_v35 }
 0x872   :  { %v952_v38 = vadd.f32 %v951_v36, %v950_v37 }
 0x874   :  { %v953_v39 = vmax.f32 %v952_v38, 0.0 }
 0x876   :  { %1451 = vmatmul.mubr.msk.f32.vlgmr.msra.gmra.mxu0 %vm960_vm8, %v953_v39 }
 0x936   :  { %v1030_v48 = vpop.f32.mrf.mxu0 }
 0x937   :  { %1035 = vrot.lane.b32.xlu0 %v1030_v48, %s1539_s28 }
 0x938   :  { %v1452_v49 = vpop.f32.mrf.mxu0 }
 0x9a9   :  { %v1036_v50 = vpop.permute.xlu0 %1035 }
 0x9aa   :  { %1039 = vst.msk [vmem:[#allocation2] sm:$0xff] %vm1038_vm9, %v1036_v50 }
 0x9b1   :  { %v1040_v52 = vld [vmem:[#allocation2] sm:$0xff] }
 0x9b2   :  { %v1042_v54 = vmul.f32 %v1041_v51, %v1040_v52 }
 0x9b4   :  { %v1044_v55 = vadd.f32 %v1043_v53, %v1042_v54 }
 0x9b6   :  { %v1045_v57 = vmax.f32 %v1044_v55, 0.0 }
 0x9b8   :  { %1470 = vmatmul.mubr.msk.f32.vlgmr.msra.gmra.mxu1 %vm52_vm1, %v1045_v57 }
 0xa78   :  { %v1124_v59 = vpop.f32.mrf.mxu1 }
 0xa79   :  { %v1125_v60 = vadd.f32 %v1124_v59, %v1054_v58 }
 0xa7a   :  { %v1471_v62 = vpop.f32.mrf.mxu1 }
 0xa7b   :  { %1128 = vst [vmem:[%s1729_s3] sm:$0xff] %v1125_v60 }
 0xa7c   :  { %1133 = vsyncpa [#allocation4], 1 }
 0xa7d   :  { %1134 = vsyncpa [#allocation6], 1 }

</bundles_post_ra>
